<compile_context>
chip_gen: v6e
topology: v6e:2x2x1
jax: 0.10.0
libtpu: 0.0.40
codegen_flags: <defaults>
</compile_context>

<pallas_src>
import jax
import jax.numpy as jnp
from jax.experimental import pallas as pl
from jax.experimental.pallas import tpu as pltpu


# ----------------------------------------------------------------------------
# helpers
# ----------------------------------------------------------------------------
def _round_up(x, m):
    return (x + m - 1) // m * m


_VMEM_CAP = None


def _vmem_capacity_bytes():
    """Physical VMEM per TensorCore (generation-aware), with a safe fallback."""
    global _VMEM_CAP
    if _VMEM_CAP is None:
        try:
            _VMEM_CAP = int(pltpu.get_tpu_info().vmem_capacity_bytes)
        except Exception:
            _VMEM_CAP = 64 * 1024 * 1024  # conservative (v7x-sized)
    return _VMEM_CAP


def _block_bytes(shape2d, dtype):
    """Approx VMEM footprint of one (rows, cols) block incl. tiling padding."""
    r, c = shape2d
    itemsize = jnp.dtype(dtype).itemsize
    sub = 8 * max(1, 4 // itemsize)  # f32 -> 8 sublanes, bf16 -> 16, int8 -> 32
    return _round_up(max(r, 1), sub) * _round_up(max(c, 1), 128) * itemsize


def _grow_tile(unit, limit, fits):
    """Largest unit*2^k <= limit such that fits(t) holds (best effort)."""
    t = unit
    while t * 2 <= limit and fits(t * 2):
        t *= 2
    return t


M_UNIT = 16  # M-tile granularity: bf16 sublane-pack friendly, fine for f32 too


# ----------------------------------------------------------------------------
# Kernel bodies
# ----------------------------------------------------------------------------
def _linear_kernel(x_ref, w_ref, b_ref, o_ref):
    acc = jnp.dot(x_ref[...], w_ref[...], preferred_element_type=jnp.float32)
    o_ref[...] = (acc + b_ref[...]).astype(o_ref.dtype)


def _linear2_kernel(x_ref, w1_ref, b1_ref, w2_ref, b2_ref, o_ref, h_ref):
    # h = x @ w1 + b1 computed once per M tile (j == 0), reused across N tiles.
    @pl.when(pl.program_id(1) == 0)
    def _():
        h_ref[...] = (
            jnp.dot(x_ref[...], w1_ref[...], preferred_element_type=jnp.float32)
            + b1_ref[...]
        )

    h = h_ref[...].astype(w2_ref.dtype)
    o_ref[...] = (
        jnp.dot(h, w2_ref[...], preferred_element_type=jnp.float32) + b2_ref[...]
    ).astype(o_ref.dtype)


# ----------------------------------------------------------------------------
# Single linear  y = x @ w + b
# ----------------------------------------------------------------------------
def pallas_linear(x, w, b, *, compute_dtype=jnp.bfloat16, max_tm=None,
                  max_tn=4096, allow_resident=True, vmem_budget_bytes=None):
    """y = x @ w + b.  x: (M, K), w: (K, N), b: (N,) -> (M, N) in x.dtype."""
    M, K = x.shape
    Kw, N = w.shape
    assert K == Kw and b.shape == (N,)
    out_dtype = x.dtype

    cap = _vmem_capacity_bytes()
    budget = int(cap * 0.70) if vmem_budget_bytes is None else int(vmem_budget_bytes)
    vmem_limit = int(cap * 0.80)
    if max_tm is None:
        max_tm = 1024 if cap >= (96 << 20) else 512

    cdt = jnp.dtype(compute_dtype)
    obytes = jnp.dtype(out_dtype).itemsize
    x_c = x.astype(cdt) if x.dtype != cdt else x
    w_c = w.astype(cdt) if w.dtype != cdt else w
    b_c = b.reshape(1, N).astype(jnp.float32)

    # ---- plan A: whole weight resident in VMEM, 1-D grid over M ------------
    resident = 2 * (_block_bytes((K, N), cdt) + _block_bytes((1, N), jnp.float32))

    def res_step(tm):
        return (resident + 2 * _block_bytes((tm, K), cdt)
                + 2 * _block_bytes((tm, N), out_dtype))

    if allow_resident and res_step(M_UNIT) <= budget:
        m_cap = min(max_tm, max(M_UNIT, _round_up(M, M_UNIT)))
        tm = _grow_tile(M_UNIT, m_cap, lambda t: res_step(t) <= budget)
        while pl.cdiv(M, tm) < 2 and tm > M_UNIT:   # give both v7x TCs work
            tm //= 2
        grid = (pl.cdiv(M, tm),)

        flops = 2 * M * K * N
        bytes_accessed = int(M * K * cdt.itemsize + K * N * cdt.itemsize
                             + N * 4 + M * N * obytes)

        return pl.pallas_call(
            _linear_kernel,
            out_shape=jax.ShapeDtypeStruct((M, N), out_dtype),
            grid_spec=pltpu.PrefetchScalarGridSpec(
                num_scalar_prefetch=0,
                grid=grid,
                in_specs=[
                    pl.BlockSpec((tm, K), lambda i: (i, 0)),   # activation tile
                    pl.BlockSpec((K, N), lambda i: (0, 0)),    # resident weight
                    pl.BlockSpec((1, N), lambda i: (0, 0)),    # resident bias
                ],
                out_specs=pl.BlockSpec((tm, N), lambda i: (i, 0)),
            ),
            compiler_params=pltpu.CompilerParams(
                dimension_semantics=("parallel",),
                vmem_limit_bytes=vmem_limit,
            ),
            cost_estimate=pl.CostEstimate(flops=flops, transcendentals=0,
                                          bytes_accessed=bytes_accessed),
        )(x_c, w_c, b_c)

    # ---- plan B: 2-D streamed grid; re-stream the smaller operand ----------
    def str_step(tm, tn):
        return 2 * (_block_bytes((tm, K), cdt) + _block_bytes((K, tn), cdt)
                    + _block_bytes((1, tn), jnp.float32)
                    + _block_bytes((tm, tn), out_dtype))

    n_cap = min(max_tn, max(128, _round_up(N, 128)))
    tn = _grow_tile(128, n_cap, lambda t: str_step(M_UNIT, t) <= budget)
    m_cap = min(max_tm, max(M_UNIT, _round_up(M, M_UNIT)))
    tm = _grow_tile(M_UNIT, m_cap, lambda t: str_step(t, tn) <= budget)
    while pl.cdiv(M, tm) < 2 and tm > M_UNIT:
        tm //= 2
    mt, nt = pl.cdiv(M, tm), pl.cdiv(N, tn)

    # With M outermost the weight is re-fetched per M tile; with N outermost
    # the activation is.  Pick the order that re-streams fewer bytes.
    m_outer = mt * N <= nt * M
    if m_outer:
        grid = (mt, nt)
        x_map = lambda i, j: (i, 0)
        w_map = lambda i, j: (0, j)
        b_map = lambda i, j: (0, j)
        o_map = lambda i, j: (i, j)
    else:
        grid = (nt, mt)
        x_map = lambda j, i: (i, 0)
        w_map = lambda j, i: (0, j)
        b_map = lambda j, i: (0, j)
        o_map = lambda j, i: (i, j)

    flops = 2 * M * K * N
    bytes_accessed = int((1 if m_outer else nt) * M * K * cdt.itemsize
                         + (mt if m_outer else 1) * K * N * cdt.itemsize
                         + (mt if m_outer else 1) * N * 4
                         + M * N * obytes)

    return pl.pallas_call(
        _linear_kernel,
        out_shape=jax.ShapeDtypeStruct((M, N), out_dtype),
        grid_spec=pltpu.PrefetchScalarGridSpec(
            num_scalar_prefetch=0,
            grid=grid,
            in_specs=[
                pl.BlockSpec((tm, K), x_map),
                pl.BlockSpec((K, tn), w_map),
                pl.BlockSpec((1, tn), b_map),
            ],
            out_specs=pl.BlockSpec((tm, tn), o_map),
        ),
        compiler_params=pltpu.CompilerParams(
            dimension_semantics=("parallel", "parallel"),
            vmem_limit_bytes=vmem_limit,
        ),
        cost_estimate=pl.CostEstimate(flops=flops, transcendentals=0,
                                      bytes_accessed=bytes_accessed),
    )(x_c, w_c, b_c)


# ----------------------------------------------------------------------------
# Fused two-layer linear  y = (x @ w1 + b1) @ w2 + b2
#   - intermediate h lives in a VMEM scratch (never written to HBM)
#   - N axis tiled ("arbitrary") so large vocabularies keep the fusion
# ----------------------------------------------------------------------------
def pallas_linear2(x, w1, b1, w2, b2, *, compute_dtype=jnp.bfloat16,
                   max_tm=None, max_tn=4096, vmem_budget_bytes=None):
    M, K = x.shape
    Kw, mid = w1.shape
    midw, N = w2.shape
    assert K == Kw and mid == midw and b1.shape == (mid,) and b2.shape == (N,)
    out_dtype = x.dtype

    cap = _vmem_capacity_bytes()
    budget = int(cap * 0.70) if vmem_budget_bytes is None else int(vmem_budget_bytes)
    vmem_limit = int(cap * 0.80)
    if max_tm is None:
        max_tm = 1024 if cap >= (96 << 20) else 512

    cdt = jnp.dtype(compute_dtype)
    obytes = jnp.dtype(out_dtype).itemsize

    resident = 2 * (_block_bytes((K, mid), cdt)
                    + _block_bytes((1, mid), jnp.float32))

    def step(tm, tn):
        return (resident
                + 2 * (_block_bytes((tm, K), cdt)
                       + _block_bytes((mid, tn), cdt)
                       + _block_bytes((1, tn), jnp.float32)
                       + _block_bytes((tm, tn), out_dtype))
                + _block_bytes((tm, mid), jnp.float32))  # h scratch (1 copy)

    if step(M_UNIT, 128) > budget:
        # First weight cannot stay resident -> intermediate via HBM (rare).
        h = pallas_linear(x, w1, b1, compute_dtype=compute_dtype, max_tm=max_tm,
                          max_tn=max_tn, vmem_budget_bytes=vmem_budget_bytes)
        return pallas_linear(h, w2, b2, compute_dtype=compute_dtype, max_tm=max_tm,
                             max_tn=max_tn, vmem_budget_bytes=vmem_budget_bytes)

    # Prefer the whole (mid, N) second weight resident; otherwise tile N.
    if _round_up(N, 128) <= max_tn and step(M_UNIT, N) <= budget:
        tn = N
    else:
        tn = _grow_tile(128, min(max_tn, max(128, _round_up(N, 128))),
                        lambda t: step(M_UNIT, t) <= budget)
    m_cap = min(max_tm, max(M_UNIT, _round_up(M, M_UNIT)))
    tm = _grow_tile(M_UNIT, m_cap, lambda t: step(t, tn) <= budget)
    while pl.cdiv(M, tm) < 2 and tm > M_UNIT:       # give both v7x TCs work
        tm //= 2
    mt, nt = pl.cdiv(M, tm), pl.cdiv(N, tn)
    grid = (mt, nt)

    x_c = x.astype(cdt) if x.dtype != cdt else x
    w1_c = w1.astype(cdt) if w1.dtype != cdt else w1
    w2_c = w2.astype(cdt) if w2.dtype != cdt else w2
    b1_c = b1.reshape(1, mid).astype(jnp.float32)
    b2_c = b2.reshape(1, N).astype(jnp.float32)

    flops = 2 * M * K * mid + 2 * M * mid * N
    bytes_accessed = int(M * K * cdt.itemsize + K * mid * cdt.itemsize + mid * 4
                         + (mt if nt > 1 else 1) * (mid * N * cdt.itemsize + N * 4)
                         + M * N * obytes)

    return pl.pallas_call(
        _linear2_kernel,
        out_shape=jax.ShapeDtypeStruct((M, N), out_dtype),
        grid_spec=pltpu.PrefetchScalarGridSpec(
            num_scalar_prefetch=0,
            grid=grid,
            in_specs=[
                pl.BlockSpec((tm, K), lambda i, j: (i, 0)),    # x tile (per i)
                pl.BlockSpec((K, mid), lambda i, j: (0, 0)),   # w1 resident
                pl.BlockSpec((1, mid), lambda i, j: (0, 0)),   # b1 resident
                pl.BlockSpec((mid, tn), lambda i, j: (0, j)),  # w2 (N-tiled)
                pl.BlockSpec((1, tn), lambda i, j: (0, j)),    # b2 (N-tiled)
            ],
            out_specs=pl.BlockSpec((tm, tn), lambda i, j: (i, j)),
            scratch_shapes=[pltpu.VMEM((tm, mid), jnp.float32)],
        ),
        compiler_params=pltpu.CompilerParams(
            dimension_semantics=("parallel", "arbitrary"),
            vmem_limit_bytes=vmem_limit,
        ),
        cost_estimate=pl.CostEstimate(flops=flops, transcendentals=0,
                                      bytes_accessed=bytes_accessed),
    )(x_c, w1_c, b1_c, w2_c, b2_c)


# ----------------------------------------------------------------------------
# CTC head
# ----------------------------------------------------------------------------
def init_ctc_params(key, in_channels, n_class, mid_channels=None):
    """Synthetic parameters mirroring nn.Linear shapes; weights stored as
    (in_features, out_features) so kernels compute x @ w + b."""

    def linear_params(k, fan_in, fan_out):
        kw, kb = jax.random.split(k)
        bound = 1.0 / jnp.sqrt(jnp.float32(fan_in))
        w = jax.random.uniform(kw, (fan_in, fan_out), jnp.float32, -bound, bound)
        b = jax.random.uniform(kb, (fan_out,), jnp.float32, -bound, bound)
        return w, b

    if mid_channels is None:
        w, b = linear_params(key, in_channels, n_class)
        return {"fc": (w, b)}
    k1, k2 = jax.random.split(key)
    w1, b1 = linear_params(k1, in_channels, mid_channels)
    w2, b2 = linear_params(k2, mid_channels, n_class)
    return {"fc1": (w1, b1), "fc2": (w2, b2)}


@jax.jit
def ctc_forward(x, params):
    """Forward of the CTC head. x: (B, T, C) -> (B, T, n_class)."""
    B, T, C = x.shape
    x2d = x.reshape(B * T, C)
    if "fc" in params:
        w, b = params["fc"]
        y = pallas_linear(x2d, w, b)
    else:
        w1, b1 = params["fc1"]
        w2, b2 = params["fc2"]
        y = pallas_linear2(x2d, w1, b1, w2, b2)
    return y.reshape(B, T, -1)


def ctc_forward_ref(x, params):
    B, T, C = x.shape
    x2d = x.reshape(B * T, C)
    if "fc" in params:
        w, b = params["fc"]
        y = x2d @ w + b
    else:
        w1, b1 = params["fc1"]
        w2, b2 = params["fc2"]
        y = (x2d @ w1 + b1) @ w2 + b2
    return y.reshape(B, T, -1)


if __name__ == "__main__":
    key = jax.random.PRNGKey(0)
    kx, kp1, kp2, kx3, kw3, kb3, kp4 = jax.random.split(key, 7)

    # bf16 compute vs f32 reference -> widened tolerance (review note).
    ATOL = RTOL = 5e-2

    # Case 1: mid_channels=None -> single Linear (resident-weight path).
    B, T, C, n_class, mid = 2, 8, 32, 16, 24
    x = jax.random.normal(kx, (B, T, C), jnp.float32)
    params1 = init_ctc_params(kp1, C, n_class, mid_channels=None)
    out1 = jax.block_until_ready(ctc_forward(x, params1))
    ref1 = ctc_forward_ref(x, params1)
    assert out1.shape == (B, T, n_class)
    assert jnp.allclose(out1, ref1, atol=ATOL, rtol=RTOL), "case1 mismatch"

    # Case 2: mid_channels=24 -> fused two-Linear kernel (h stays in VMEM).
    params2 = init_ctc_params(kp2, C, n_class, mid_channels=mid)
    out2 = jax.block_until_ready(ctc_forward(x, params2))
    ref2 = ctc_forward_ref(x, params2)
    assert out2.shape == (B, T, n_class)
    assert jnp.allclose(out2, ref2, atol=ATOL, rtol=RTOL), "case2 mismatch"

    # Case 3: exercise the streamed 2-D path (ragged M and N blocks).
    M3, K3, N3 = 200, 32, 300
    x3 = jax.random.normal(kx3, (M3, K3), jnp.float32)
    w3 = jax.random.normal(kw3, (K3, N3), jnp.float32) * 0.05
    b3 = jax.random.normal(kb3, (N3,), jnp.float32) * 0.05
    out3 = jax.block_until_ready(
        pallas_linear(x3, w3, b3, allow_resident=False, max_tn=128))
    ref3 = x3 @ w3 + b3
    assert jnp.allclose(out3, ref3, atol=ATOL, rtol=RTOL), "case3 mismatch"

    # Case 4: exercise the N-tiled fused path (multiple N tiles, ragged edges).
    params4 = init_ctc_params(kp4, K3, N3, mid_channels=40)
    w41, b41 = params4["fc1"]
    w42, b42 = params4["fc2"]
    out4 = jax.block_until_ready(
        pallas_linear2(x3, w41, b41, w42, b42, max_tn=128))
    ref4 = (x3 @ w41 + b41) @ w42 + b42
    assert jnp.allclose(out4, ref4, atol=ATOL, rtol=RTOL), "case4 mismatch"

    print("KERNEL_OK")
</pallas_src>

<mosaic_0001>
module attributes {stable_mosaic.version = 11 : i64} {
  func.func @_linear_kernel(%arg0: i32, %arg1: memref<16x32xbf16, #tpu.memory_space<vmem>>, %arg2: memref<32x16xbf16, #tpu.memory_space<vmem>>, %arg3: memref<1x16xf32, #tpu.memory_space<vmem>>, %arg4: memref<16x16xf32, #tpu.memory_space<vmem>>) attributes {dimension_semantics = [#tpu.dimension_semantics<parallel>], iteration_bounds = array<i64: 1>, scalar_prefetch = 0 : i64, scratch_operands = 0 : i64, tpu.core_type = #tpu.core_type<tc>, window_params = [{transform_indices = @transform_0, window_bounds = array<i64: 16, 32>}, {pipeline_mode = #tpu.pipeline_mode<synchronous>, transform_indices = @transform_1, window_bounds = array<i64: 32, 16>}, {pipeline_mode = #tpu.pipeline_mode<synchronous>, transform_indices = @transform_2, window_bounds = array<i64: 1, 16>}, {transform_indices = @transform_3, window_bounds = array<i64: 16, 16>}]} {
    %c0 = arith.constant 0 : index
    %c0_0 = arith.constant 0 : index
    %0 = vector.load %arg1[%c0, %c0_0] : memref<16x32xbf16, #tpu.memory_space<vmem>>, vector<16x32xbf16>
    %c0_1 = arith.constant 0 : index
    %c0_2 = arith.constant 0 : index
    %1 = vector.load %arg2[%c0_1, %c0_2] : memref<32x16xbf16, #tpu.memory_space<vmem>>, vector<32x16xbf16>
    %cst = arith.constant dense<0.000000e+00> : vector<16x16xf32>
    %2 = tpu.matmul %0, %1, %cst {dimension_numbers = #tpu.dot_dimension_numbers<[1], [0], [0], [1], [0, 0, 1, 1], [], []>} : vector<16x32xbf16>, vector<32x16xbf16>, vector<16x16xf32> -> vector<16x16xf32>
    %c0_3 = arith.constant 0 : index
    %c0_4 = arith.constant 0 : index
    %3 = vector.load %arg3[%c0_3, %c0_4] : memref<1x16xf32, #tpu.memory_space<vmem>>, vector<1x16xf32>
    %4 = vector.broadcast %3 : vector<1x16xf32> to vector<16x16xf32>
    %5 = arith.addf %2, %4 : vector<16x16xf32>
    %c0_5 = arith.constant 0 : index
    %c0_6 = arith.constant 0 : index
    %6 = vector.load %arg4[%c0_5, %c0_6] : memref<16x16xf32, #tpu.memory_space<vmem>>, vector<16x16xf32>
    tpu.vector_store %arg4[%c0_5, %c0_6], %5 {strides = array<i32>} : memref<16x16xf32, #tpu.memory_space<vmem>>, vector<16x16xf32>,
    return
  }
  func.func @transform_0(%arg0: i32) -> (i32, i32) {
    %c0_i32 = arith.constant 0 : i32
    %c0_i32_0 = arith.constant 0 : i32
    return %arg0, %c0_i32 : i32, i32
  }
  func.func @transform_1(%arg0: i32) -> (i32, i32) {
    %c0_i32 = arith.constant 0 : i32
    %c0_i32_0 = arith.constant 0 : i32
    %c0_i32_1 = arith.constant 0 : i32
    return %c0_i32, %c0_i32_0 : i32, i32
  }
  func.func @transform_2(%arg0: i32) -> (i32, i32) {
    %c0_i32 = arith.constant 0 : i32
    %c0_i32_0 = arith.constant 0 : i32
    %c0_i32_1 = arith.constant 0 : i32
    return %c0_i32, %c0_i32_0 : i32, i32
  }
  func.func @transform_3(%arg0: i32) -> (i32, i32) {
    %c0_i32 = arith.constant 0 : i32
    %c0_i32_0 = arith.constant 0 : i32
    return %arg0, %c0_i32 : i32, i32
  }
}

</mosaic_0001>

<bundles_post_ra>
// kernel: ctc_forward.1
= control target key start
LH: loop header
LB: loop body
LE: loop exit
PB: predicated region body
PF: predicated region fallthrough
CT: control target
= control target key end

     0   :  { %v156_v1 = vmov 0.0   ;;  %vm157_vm0 = vmmov 0   ;;  %s196_s0 = inlined_call_operand.vmem [shape: bf16[16,32], index: 0, kind: input, shape index: {}]   ;;  %s197_s1 = inlined_call_operand.vmem [shape: bf16[32,16], index: 1, kind: input, shape index: {}]   ;;  %s198_s2 = inlined_call_operand.vmem [shape: f32[1,16], index: 2, kind: input, shape index: {}]   ;;  %s199_s3 = inlined_call_operand.hbm [shape: f32[16,16], index: 3, kind: output, shape index: {}]  }
   0x1   :  { %v131_v0 = vld [vmem:[%s197_s1 + $0x8] sm:$0xff]   ;;  %118 = vmatprep.subr.bf16.mxu0 %v156_v1  ;;  %v132_v2 = vld [vmem:[%s197_s1] sm:$0xff]   ;;  %122 = vmatprep.mubr.msk.bf16.mxu0 %vm157_vm0, %v156_v1 }
   0x2   :  { %119 = vmatpush3.bf16.msra.mxu0 %v131_v0 }
   0x3   :  { %120 = vmatprep.subr.bf16.mxu0 %v156_v1 }
   0x4   :  { %8 = vsyncpa [#allocation3], 0  ;;  %v133_v3 = vld [vmem:[%s196_s0] sm:$0xff]   ;;  %vm46_vm1 = vcmask 261120   ;;  %vm91_vm2 = vcmask 130048   ;;  %s158_s20 = smov [#allocation2]  }
   0x5   :  { %v110_v4 = vld [vmem:[%s198_s2] ss:$0 sm:$0xff]  ;;  %s99_s1 = sshll.u32 %s158_s20, 4  ;;  %s100_s1 = int_to_ptr.vmem [resolvable:$true] %s99_s1 }
   0x6   :  { %121 = vmatpush3.bf16.msra.mxu0 %v132_v2  ;;  %s134_s0 = scalar_lea.vmem %s100_s1, 256  ;;  %p139_p1 = scmp.lt.s32.totalorder %s100_s1, %s100_s1 }
   0x7   :  { %p135_p0 = scmp.ne.s32.totalorder %s100_s1, %s134_s0  ;;  %p140_p2 = scmp.lt.s32.totalorder %s134_s0, %s134_s0 }
   0x9   :  { %123 = vmatmul.mubr.msk.bf16.vlgmr.msra.gmra.mxu0 %vm46_vm1, %v133_v3  ;;  %p141_p3 = por %p140_p2, %p139_p1 }
   0xb   :  { %p142_p4 = pnand %p141_p3, %p135_p0 }
  0xc9   :  { %v84_v5 = vpop.f32.mrf.mxu0 }
  0xca   :  { %v85_v6 = vadd.f32 %v110_v4, %v84_v5 }
  0xcb   :  { %v124_v7 = vpop.f32.mrf.mxu0 }
  0xcc   :  { %92 = vst.msk [vmem:[#allocation2] sm:$0xff] %vm91_vm2, %v85_v6 }
  0xcd   :  { %v87_v8 = vpop.f32.mrf.mxu0 }
  0xce   :  { %v88_v9 = vadd.f32 %v110_v4, %v87_v8 }
  0xcf   :  { %v125_v10 = vpop.f32.mrf.mxu0 }
  0xd0   :  { %93 = vst.msk [vmem:[#allocation2 + $0x8] sm:$0xff] %vm91_vm2, %v88_v9 }
  0xd1   :  { %145 = shalt.err (!%p142_p4)
}
  0xd2   :  { %s159_s2 = smov 128   ;;  %s160_s21 = smov 8  }
  0xd3   :  { %105 = dma.vmem_to_hbm [thread:$0]  %s100_s1, 256, %s199_s3, [#allocation3], %s159_s2, %s159_s2, %s160_s21  }
  0xd4   :  { %154 = dma.done.wait [#allocation3], 256  }
  0xd5   :  { %155 = vsyncadd [#allocation3], 4294967040 }
  0xd6   :  { %109 = vsyncpa [#allocation3], 1 }

</bundles_post_ra>
